<compile_context>
chip_gen: v5e
topology: v5e:2x2
jax: 0.10.0
libtpu: 0.0.40
codegen_flags: <defaults>
</compile_context>

<pallas_src>
import functools

import jax
import jax.numpy as jnp
from jax.experimental import pallas as pl
from jax.experimental.pallas import tpu as pltpu


def _decoder_kernel(x_ref, w1_ref, b1_ref, w2_ref, u_ref, b2_ref, n_o_ref, *,
                    inv_temperature, negative_slope):
    # x: (B, D)  w1: (D, H)  b1: (1, H)  w2: (1, H)  u: (B, 1)  b2: (1,) [SMEM]
    x = x_ref[...]

    # ---- Linear 1 (MXU) + LeakyReLU (VPU) ----
    h = jnp.dot(x, w1_ref[...], preferred_element_type=jnp.float32) + b1_ref[...]
    h = jnp.where(h >= 0, h, negative_slope * h)

    # ---- Linear 2: out_features == 1 -> VPU multiply + XLU lane reduction ----
    logits = jnp.sum(h * w2_ref[...], axis=-1, keepdims=True) + b2_ref[0]

    # ---- RelaxedBernoulli reparameterized sample ----
    # clamp_probs(u), logistic noise log(u) - log1p(-u), fold 1/temperature.
    eps = float(jnp.finfo(jnp.float32).eps)
    u = jnp.clip(u_ref[...], eps, 1.0 - eps)
    logistic_noise = jnp.log(u) - jnp.log1p(-u)
    n_o_ref[...] = jax.nn.sigmoid((logits + logistic_noise) * inv_temperature)


def decoder_forward(n_h, w1, b1, w2_row, b2, u, *, temperature,
                    negative_slope=0.01):
    """Fused decoder forward. Returns the relaxed-Bernoulli sample n_o (B, 1)."""
    B, D = n_h.shape
    H = w1.shape[1]
    assert w1.shape == (D, H)
    assert b1.shape == (1, H)
    assert w2_row.shape == (1, H)
    assert b2.shape == (1,)
    assert u.shape == (B, 1)

    kernel = functools.partial(
        _decoder_kernel,
        inv_temperature=1.0 / float(temperature),
        negative_slope=float(negative_slope),
    )

    vmem = lambda shape: pl.BlockSpec(shape, lambda: tuple(0 for _ in shape))
    smem = pl.BlockSpec(memory_space=pltpu.SMEM)

    # TODO(synk): at toy sizes the whole problem is a single grid point. If B
    # grows, tile the batch with a ("parallel",) grid and a lane-dense
    # (transposed) output so stores are unmasked and v7x can split the batch
    # across its two TensorCores; feed bf16 inputs to the first matmul
    # (preferred_element_type=f32) on v6e/v7x at real model sizes.
    return pl.pallas_call(
        kernel,
        out_shape=jax.ShapeDtypeStruct((B, 1), jnp.float32),
        in_specs=[
            vmem((B, D)),     # n_h
            vmem((D, H)),     # w1
            vmem((1, H)),     # b1
            vmem((1, H)),     # w2 row
            vmem((B, 1)),     # uniform noise
            smem,             # b2 scalar (1,) in SMEM
        ],
        out_specs=vmem((B, 1)),
    )(n_h, w1, b1, w2_row, u, b2)


if __name__ == "__main__":
    # Small shapes consistent with the module: n_h is (batch, in_features).
    B = 8             # batch
    D = 32            # in_features (resolved by LazyLinear)
    H = 32            # hidden_size
    temperature = 0.5

    key = jax.random.PRNGKey(0)
    k_x, k_w1, k_b1, k_w2, k_b2, k_u = jax.random.split(key, 6)

    n_h = jax.random.normal(k_x, (B, D), dtype=jnp.float32)

    # Deterministic parameter init (PyTorch Linear-like uniform bounds).
    bound1 = 1.0 / (D ** 0.5)
    w1 = jax.random.uniform(k_w1, (D, H), jnp.float32, -bound1, bound1)
    b1 = jax.random.uniform(k_b1, (1, H), jnp.float32, -bound1, bound1)
    bound2 = 1.0 / (H ** 0.5)
    w2_row = jax.random.uniform(k_w2, (1, H), jnp.float32, -bound2, bound2)
    b2 = jax.random.uniform(k_b2, (1,), jnp.float32, -bound2, bound2)

    # Uniform noise for RelaxedBernoulli.rsample (host-side, passed in).
    u = jax.random.uniform(k_u, (B, 1), dtype=jnp.float32)

    n_o = decoder_forward(n_h, w1, b1, w2_row, b2, u, temperature=temperature)
    n_o = jax.block_until_ready(n_o)

    # Pure-JAX reference using the same uniform noise.
    h_ref = n_h @ w1 + b1
    h_ref = jnp.where(h_ref >= 0, h_ref, 0.01 * h_ref)
    logits_ref = h_ref @ w2_row.T + b2
    eps = float(jnp.finfo(jnp.float32).eps)
    u_c = jnp.clip(u, eps, 1.0 - eps)
    ref = jax.nn.sigmoid((logits_ref + jnp.log(u_c) - jnp.log1p(-u_c)) / temperature)

    assert n_o.shape == (B, 1)
    assert bool(jnp.all((n_o > 0.0) & (n_o < 1.0)))
    assert jnp.allclose(n_o, ref, atol=1e-5, rtol=1e-5)
    print("KERNEL_OK")
</pallas_src>

<mosaic_0001>
module attributes {stable_mosaic.version = 11 : i64} {
  func.func @_decoder_kernel(%arg0: memref<8x32xf32, #tpu.memory_space<vmem>>, %arg1: memref<32x32xf32, #tpu.memory_space<vmem>>, %arg2: memref<1x32xf32, #tpu.memory_space<vmem>>, %arg3: memref<1x32xf32, #tpu.memory_space<vmem>>, %arg4: memref<8x1xf32, #tpu.memory_space<vmem>>, %arg5: memref<1xf32, #tpu.memory_space<smem>>, %arg6: memref<8x1xf32, #tpu.memory_space<vmem>>) attributes {dimension_semantics = [], scalar_prefetch = 0 : i64, scratch_operands = 0 : i64, tpu.core_type = #tpu.core_type<tc>} {
    %c0 = arith.constant 0 : index
    %c0_0 = arith.constant 0 : index
    %0 = vector.load %arg0[%c0, %c0_0] : memref<8x32xf32, #tpu.memory_space<vmem>>, vector<8x32xf32>
    %c0_1 = arith.constant 0 : index
    %c0_2 = arith.constant 0 : index
    %1 = vector.load %arg1[%c0_1, %c0_2] : memref<32x32xf32, #tpu.memory_space<vmem>>, vector<32x32xf32>
    %cst = arith.constant dense<0.000000e+00> : vector<8x32xf32>
    %2 = tpu.matmul %0, %1, %cst {dimension_numbers = #tpu.dot_dimension_numbers<[1], [0], [0], [1], [0, 0, 1, 1], [], []>} : vector<8x32xf32>, vector<32x32xf32>, vector<8x32xf32> -> vector<8x32xf32>
    %c0_3 = arith.constant 0 : index
    %c0_4 = arith.constant 0 : index
    %3 = vector.load %arg2[%c0_3, %c0_4] : memref<1x32xf32, #tpu.memory_space<vmem>>, vector<1x32xf32>
    %4 = vector.broadcast %3 : vector<1x32xf32> to vector<8x32xf32>
    %5 = arith.addf %2, %4 : vector<8x32xf32>
    %cst_5 = arith.constant 0.000000e+00 : f32
    %6 = vector.broadcast %cst_5 : f32 to vector<8x32xf32>
    %7 = arith.cmpf oge, %5, %6 : vector<8x32xf32>
    %cst_6 = arith.constant 0.00999999977 : f32
    %8 = vector.broadcast %cst_6 : f32 to vector<8x32xf32>
    %9 = arith.mulf %8, %5 : vector<8x32xf32>
    %10 = arith.select %7, %5, %9 : vector<8x32xi1>, vector<8x32xf32>
    %c0_7 = arith.constant 0 : index
    %c0_8 = arith.constant 0 : index
    %11 = vector.load %arg3[%c0_7, %c0_8] : memref<1x32xf32, #tpu.memory_space<vmem>>, vector<1x32xf32>
    %12 = vector.broadcast %11 : vector<1x32xf32> to vector<8x32xf32>
    %13 = arith.mulf %10, %12 : vector<8x32xf32>
    %cst_9 = arith.constant dense<0.000000e+00> : vector<8xf32>
    %14 = vector.multi_reduction <add>, %13, %cst_9 [1] : vector<8x32xf32> to vector<8xf32>
    %15 = vector.shape_cast %14 : vector<8xf32> to vector<8x1xf32>
    %c0_10 = arith.constant 0 : index
    %16 = memref.load %arg5[%c0_10] : memref<1xf32, #tpu.memory_space<smem>>
    %17 = vector.broadcast %16 : f32 to vector<8x1xf32>
    %18 = arith.addf %15, %17 : vector<8x1xf32>
    %c0_11 = arith.constant 0 : index
    %c0_12 = arith.constant 0 : index
    %19 = vector.load %arg4[%c0_11, %c0_12] : memref<8x1xf32, #tpu.memory_space<vmem>>, vector<8x1xf32>
    %cst_13 = arith.constant 1.1920929E-7 : f32
    %cst_14 = arith.constant 0.99999988 : f32
    %20 = vector.broadcast %cst_13 : f32 to vector<8x1xf32>
    %21 = arith.maximumf %20, %19 : vector<8x1xf32>
    %22 = vector.broadcast %cst_14 : f32 to vector<8x1xf32>
    %23 = arith.minimumf %22, %21 : vector<8x1xf32>
    %24 = math.log %23 : vector<8x1xf32>
    %cst_15 = arith.constant 0.000000e+00 : f32
    %25 = vector.broadcast %cst_15 : f32 to vector<8x1xf32>
    %26 = arith.subf %25, %23 : vector<8x1xf32>
    %27 = math.log1p %26 : vector<8x1xf32>
    %28 = arith.subf %24, %27 : vector<8x1xf32>
    %29 = arith.addf %18, %28 : vector<8x1xf32>
    %cst_16 = arith.constant 2.000000e+00 : f32
    %30 = vector.broadcast %cst_16 : f32 to vector<8x1xf32>
    %31 = arith.mulf %29, %30 : vector<8x1xf32>
    %32 = arith.negf %31 : vector<8x1xf32>
    %33 = math.exp %32 : vector<8x1xf32>
    %cst_17 = arith.constant 1.000000e+00 : f32
    %34 = vector.broadcast %cst_17 : f32 to vector<8x1xf32>
    %35 = arith.addf %34, %33 : vector<8x1xf32>
    %36 = arith.divf %34, %35 : vector<8x1xf32>
    %c0_18 = arith.constant 0 : index
    %c0_19 = arith.constant 0 : index
    %37 = vector.load %arg6[%c0_18, %c0_19] : memref<8x1xf32, #tpu.memory_space<vmem>>, vector<8x1xf32>
    tpu.vector_store %arg6[%c0_18, %c0_19], %36 {strides = array<i32>} : memref<8x1xf32, #tpu.memory_space<vmem>>, vector<8x1xf32>,
    return
  }
}

</mosaic_0001>

<bundles_post_ra>
// kernel: tpu_custom_call.1
= control target key start
LH: loop header
LB: loop body
LE: loop exit
PB: predicated region body
PF: predicated region fallthrough
CT: control target
= control target key end

     0   :  { %12 = vsyncpa [#allocation4], 0  ;;  %s172_s24 = smov [#allocation3]   ;;  %s173_s26 = smov 128   ;;  %s231_s0 = inlined_call_operand.vmem [shape: f32[8,32], index: 0, kind: input, shape index: {}]   ;;  %s232_s1 = inlined_call_operand.hbm [shape: f32[32,32], index: 1, kind: input, shape index: {}]   ;;  %s233_s2 = inlined_call_operand.vmem [shape: f32[1,32], index: 2, kind: input, shape index: {}]   ;;  %s234_s3 = inlined_call_operand.vmem [shape: f32[1,32], index: 3, kind: input, shape index: {}]   ;;  %s235_s4 = inlined_call_operand.vmem [shape: f32[8,1], index: 4, kind: input, shape index: {}]   ;;  %s236_s5 = inlined_call_operand.<no memory space> [shape: f32[1], index: 5, kind: input, shape index: {}]   ;;  %s237_s6 = inlined_call_operand.vmem [shape: f32[8,1], index: 6, kind: output, shape index: {}]  }
   0x1   :  { %s19_s23 = sshll.u32 %s232_s1, 4  ;;  %s21_s25 = sshll.u32 %s172_s24, 4  ;;  %s20_s23 = int_to_ptr.hbm [resolvable:$true] %s19_s23  ;;  %s22_s25 = int_to_ptr.vmem [resolvable:$true] %s21_s25 }
   0x2   :  { %s174_s27 = smov 8  }
   0x3   :  { %27 = dma.hbm_to_vmem [thread:$0]  %s20_s23, 512, %s22_s25, [#allocation4], %s173_s26, %s173_s26, %s174_s27  }
   0x4   :  { %170 = dma.done.wait [#allocation4], 512  }
   0x5   :  { %171 = vsyncadd [#allocation4], 4294966784  ;;  %v44_v0 = vld [vmem:[#allocation3 + $0x18] sm:$0xff]  ;;  %v43_v1 = vld [vmem:[#allocation3 + $0x10] sm:$0xff]  ;;  %vm49_vm0 = vcmask 261120   ;;  %v85_v27 = vstv %s236_s5  ;;  %vm124_vm6 = vcmask 7168  }
   0x6   :  { %65 = vmatpush.msra.mxu0 %v44_v0  ;;  %v42_v2 = vld [vmem:[#allocation3 + $0x8] sm:$0xff]  ;;  %v41_v3 = vld [vmem:[#allocation3] sm:$0xff] }
   0x7   :  { %v40_v4 = vld [vmem:[%s231_s0] sm:$0xff] }
   0x8   :  { %66 = vmatpush.msra.mxu0 %v43_v1  ;;  %v136_v5 = vld [vmem:[%s233_s2] ss:$0 sm:$0xff] }
   0x9   :  { %v137_v8 = vld [vmem:[%s234_s3] ss:$0 sm:$0xff] }
   0xa   :  { %67 = vmatpush.msra.mxu0 %v42_v2  ;;  %v87_v13 = vld [vmem:[%s235_s4] sm:$0xff] }
   0xb   :  { %v88_v14 = vmax.f32 %v87_v13, 1.1920929e-07 }
   0xc   :  { %68 = vmatpush.msra.mxu0 %v41_v3 }
   0xd   :  { %131 = vmatmul.msk.f32.vlgmr.msra.gmra.mxu0 %vm49_vm0, %v40_v4  ;;  %v89_v15 = vmin.f32 %v88_v14, 0.9999999 }
   0xf   :  { %v92_v16 = vsub.f32 0.0, %v89_v15 }
  0x11   :  { %v93_v17 = vadd.f32 1.0, %v92_v16  ;;  %v96_v18 = vmul.f32 -0.5, %v92_v16  ;;  %v99_v21 = vand.u32 2147483647, %v92_v16 }
  0x13   :  { %138 = vlog2.f32 %v93_v17  ;;  %v97_v19 = vadd.f32 1.0, %v96_v18  ;;  %vm100_vm2 = vcmp.lt.f32.partialorder %v99_v21, 0.0004427343 }
  0x14   :  { %140 = vlog2.f32 %v89_v15 }
  0x15   :  { %v98_v24 = vmul.f32 %v97_v19, %v92_v16 }
  0x19   :  { %v139_v20 = vpop.eup %138 }
  0x1a   :  { %v141_v22 = vpop.eup %140  ;;  %v95_v23 = vmul.f32 0.6931472, %v139_v20 }
  0x1b   :  { %v91_v25 = vmul.f32 0.6931472, %v141_v22 }
  0x1c   :  { %v101_v26 = vsel %vm100_vm2, %v98_v24, %v95_v23 }
  0x1d   :  { %v102_v28 = vsub.f32 %v91_v25, %v101_v26 }
  0x8a   :  { %v70_v6 = vpop.f32.mrf.mxu0 }
  0x8b   :  { %v71_v7 = vadd.f32 %v136_v5, %v70_v6 }
  0x8d   :  { %v74_v9 = vmul.f32 0.01, %v71_v7  ;;  %vm73_vm1 = vcmp.ge.f32.partialorder %v71_v7, 0.0 }
  0x8f   :  { %v75_v10 = vsel %vm73_vm1, %v71_v7, %v74_v9 }
  0x90   :  { %v80_v11 = vmul.f32 %v137_v8, %v75_v10 }
  0x92   :  { %v81_v12 = vsel %vm49_vm0, %v80_v11, 0.0 }
  0x93   :  { %82 = vadd.xlane.f32.xlu0 %v81_v12 }
 0x106   :  { %v83_v29 = vpop.xlane.xlu0 %82 }
 0x107   :  { %v86_v30 = vadd.f32 %v85_v27, %v83_v29 }
 0x109   :  { %v103_v31 = vadd.f32 %v102_v28, %v86_v30 }
 0x10b   :  { %v132_v32 = vmul.f32 -2.0, %v103_v31 }
 0x10d   :  { %v106_v33 = vmul.f32 1.442695, %v132_v32 }
 0x10f   :  { %142 = vpow2.f32 %v106_v33 }
 0x115   :  { %v143_v34 = vpop.eup %142 }
 0x116   :  { %v108_v35 = vadd.f32 1.0, %v143_v34 }
 0x118   :  { %144 = vrcp.f32 %v108_v35  ;;  %v120_v39 = vand.u32 2147483648, %v108_v35  ;;  %v118_v41 = vand.u32 2147483647, %v108_v35  ;;  %vm114_vm4 = vweird.f32 %v108_v35 }
 0x11a   :  { %v121_v43 = vor.u32 1.1754944e-38, %v120_v39  ;;  %vm119_vm7 = vcmp.eq.f32.partialorder %v118_v41, 8.507059e+37 }
 0x11e   :  { %v145_v36 = vpop.eup %144 }
 0x11f   :  { %v110_v37 = vmul.f32 %v145_v36, %v108_v35  ;;  %vm115_vm3 = vweird.f32 %v145_v36 }
 0x120   :  { %vm116_vm5 = vmor %vm114_vm4, %vm115_vm3 }
 0x121   :  { %v111_v38 = vsub.f32 1.0, %v110_v37 }
 0x123   :  { %v112_v40 = vmul.f32 %v145_v36, %v111_v38 }
 0x125   :  { %v113_v42 = vadd.f32 %v145_v36, %v112_v40 }
 0x127   :  { %v117_v44 = vsel %vm116_vm5, %v145_v36, %v113_v42 }
 0x128   :  { %v122_v45 = vsel %vm119_vm7, %v121_v43, %v117_v44 }
 0x129   :  { %125 = vst.msk [vmem:[%s237_s6] sm:$0xff] %vm124_vm6, %v122_v45 }
 0x12a   :  { %130 = vsyncpa [#allocation4], 1 }

</bundles_post_ra>
